<compile_context>
chip_gen: v7x
topology: tpu7x:2x2x1
jax: 0.10.0
libtpu: 0.0.40
codegen_flags: <defaults>
</compile_context>

<pallas_src>
import math

import jax
import jax.numpy as jnp
from jax.experimental import pallas as pl
from jax.experimental.pallas import tpu as pltpu


def _round_up(x, m):
    return ((x + m - 1) // m) * m


_MB = 1024 * 1024
_VMEM_BUDGET = 44 * _MB   # conservative vs v7x's 64 MiB physical VMEM per TC
_VMEM_CAP = 56 * _MB


def _compiler_params(dim_semantics, est_vmem_bytes):
    kwargs = dict(dimension_semantics=dim_semantics)
    # Only raise the scoped-VMEM limit when the tiling needs it
    # (defaults: ~16 MiB scoped on v5e, 32 MiB on v6e/v7x).
    if est_vmem_bytes > 12 * _MB:
        kwargs["vmem_limit_bytes"] = int(
            min(max(est_vmem_bytes * 3 // 2, 32 * _MB), _VMEM_CAP))
    return pltpu.CompilerParams(**kwargs)


# ---------------------------------------------------------------------------
# Kernels
# ---------------------------------------------------------------------------
def _resident_heads_kernel(x_ref, w_ref, b_ref, out_ref):
    """grid = (N_tiles,): full-K row tile of x against a VMEM-resident weight."""
    acc = jnp.dot(x_ref[...], w_ref[...], preferred_element_type=jnp.float32)
    out_ref[...] = (acc + b_ref[...]).astype(out_ref.dtype)


def _ktiled_heads_kernel(x_ref, w_ref, b_ref, out_ref, acc_ref):
    """grid = (N_tiles, K_tiles): f32 accumulator over the reduction axis."""
    k = pl.program_id(1)

    @pl.when(k == 0)
    def _():
        acc_ref[...] = jnp.zeros_like(acc_ref)

    acc_ref[...] += jnp.dot(
        x_ref[...], w_ref[...], preferred_element_type=jnp.float32)

    @pl.when(k == pl.num_programs(1) - 1)
    def _():
        out_ref[...] = (acc_ref[...] + b_ref[...]).astype(out_ref.dtype)


# ---------------------------------------------------------------------------
# Parameter fusion (hoisted out of the per-call path)
# ---------------------------------------------------------------------------
def fuse_head_params(w_cls, b_cls, w_bbox, b_bbox, compute_dtype=jnp.bfloat16):
    """Fuse the cls/bbox heads into one lane-dense padded weight + bias.

    Do this ONCE (e.g. at model init) so the concat / pad / cast are not paid
    on every forward call.
    """
    c_cls = w_cls.shape[1]
    c_box = w_bbox.shape[1]
    c_tot = c_cls + c_box
    c_pad = _round_up(c_tot, 128)

    w = jnp.concatenate([w_cls, w_bbox], axis=1)
    b = jnp.concatenate([b_cls, b_bbox], axis=0).reshape(1, c_tot)
    b = b.astype(jnp.float32)
    if c_pad != c_tot:
        w = jnp.pad(w, ((0, 0), (0, c_pad - c_tot)))
        b = jnp.pad(b, ((0, 0), (0, c_pad - c_tot)))
    w = w.astype(compute_dtype)
    return w, b, c_cls, c_box


# ---------------------------------------------------------------------------
# Forward pass
# ---------------------------------------------------------------------------
def fast_rcnn_output_layers_fused(x, fused_w, fused_b, c_cls, c_box, *,
                                  tile_n=None, tile_k=None, mode="auto"):
    """Forward pass with pre-fused head parameters (see fuse_head_params)."""
    assert mode in ("auto", "resident", "ktiled")
    if x.ndim > 2:
        x = x.reshape(x.shape[0], -1)   # == torch.flatten(x, start_dim=1)
    n, d = x.shape
    c_pad = fused_w.shape[1]
    c_tot = c_cls + c_box
    assert fused_w.shape[0] == d
    assert fused_b.shape == (1, c_pad)

    compute_dtype = fused_w.dtype
    if x.dtype != compute_dtype:
        x = x.astype(compute_dtype)
    itemsize = jnp.dtype(compute_dtype).itemsize
    row_align = 8 * max(1, 4 // itemsize)   # 8 rows f32, 16 rows bf16

    # Row-tile heuristic: lane-narrow outputs -> taller tiles; keep >= 2 blocks
    # on the "parallel" axis when possible (v7x has 2 TensorCores per chip).
    if tile_n is None:
        tile_n = 1024 if c_pad <= 128 else 512
    half_rows = _round_up(max(1, (n + 1) // 2), row_align)
    tn = min(tile_n, half_rows)
    tn = max(row_align, _round_up(tn, row_align))
    tn = min(tn, _round_up(n, row_align))

    def resident_vmem(tn_):
        # Conservatively assume 2 buffers for every operand.
        return (2 * d * c_pad * itemsize          # resident fused weight
                + 2 * tn_ * d * itemsize          # x row tiles
                + 2 * tn_ * c_pad * 4             # output tiles (f32)
                + 2 * c_pad * 4)                  # bias

    if mode == "auto":
        tn_res = tn
        while resident_vmem(tn_res) > _VMEM_BUDGET and tn_res > row_align:
            tn_res = max(row_align, _round_up(tn_res // 2, row_align))
        if resident_vmem(tn_res) <= _VMEM_BUDGET:
            mode, tn = "resident", tn_res
        else:
            mode = "ktiled"

    if mode == "resident":
        # No K padding of x needed: the blocks cover the full K dimension.
        n_pad = _round_up(n, tn)
        if n_pad != n:
            x = jnp.pad(x, ((0, n_pad - n), (0, 0)))
        grid = (n_pad // tn,)
        out = pl.pallas_call(
            _resident_heads_kernel,
            out_shape=jax.ShapeDtypeStruct((n_pad, c_pad), jnp.float32),
            grid_spec=pltpu.PrefetchScalarGridSpec(
                num_scalar_prefetch=0,
                grid=grid,
                in_specs=[
                    pl.BlockSpec((tn, d), lambda i: (i, 0)),       # x row tile
                    pl.BlockSpec((d, c_pad), lambda i: (0, 0)),    # resident W
                    pl.BlockSpec((1, c_pad), lambda i: (0, 0)),    # bias
                ],
                out_specs=pl.BlockSpec((tn, c_pad), lambda i: (i, 0)),
            ),
            compiler_params=_compiler_params(
                ("parallel",), resident_vmem(tn)),
        )(x, fused_w, fused_b)
    else:
        # Fallback for weights too large to pin in VMEM: tile the reduction
        # axis with an f32 accumulator.  tk is chosen as a 128-multiple
        # divisor of round_up(D, 128) so no extra K padding is materialized.
        # TODO(synk): for very large N+D a (K outer, N inner) grid with a
        # full-output accumulator would also stream the weight only once.
        d_pad = _round_up(d, 128)
        tk_target = 2048 if tile_k is None else max(128, (tile_k // 128) * 128)
        tk = 128
        cand = (min(tk_target, d_pad) // 128) * 128
        while cand >= 128:
            if d_pad % cand == 0:
                tk = cand
                break
            cand -= 128

        n_pad = _round_up(n, tn)
        if (n_pad, d_pad) != (n, d):
            x = jnp.pad(x, ((0, n_pad - n), (0, d_pad - d)))
        w = fused_w
        if d_pad != d:
            w = jnp.pad(w, ((0, d_pad - d), (0, 0)))
        grid = (n_pad // tn, d_pad // tk)
        est = (2 * tn * tk * itemsize + 2 * tk * c_pad * itemsize
               + 2 * tn * c_pad * 4 + tn * c_pad * 4 + 2 * c_pad * 4)
        out = pl.pallas_call(
            _ktiled_heads_kernel,
            out_shape=jax.ShapeDtypeStruct((n_pad, c_pad), jnp.float32),
            grid_spec=pltpu.PrefetchScalarGridSpec(
                num_scalar_prefetch=0,
                grid=grid,
                in_specs=[
                    pl.BlockSpec((tn, tk), lambda i, k: (i, k)),
                    pl.BlockSpec((tk, c_pad), lambda i, k: (k, 0)),
                    pl.BlockSpec((1, c_pad), lambda i, k: (0, 0)),
                ],
                out_specs=pl.BlockSpec((tn, c_pad), lambda i, k: (i, 0)),
                scratch_shapes=[pltpu.VMEM((tn, c_pad), jnp.float32)],
            ),
            compiler_params=_compiler_params(("parallel", "arbitrary"), est),
        )(x, w, fused_b)

    scores = out[:n, :c_cls]
    proposal_deltas = out[:n, c_cls:c_tot]
    return scores, proposal_deltas


def fast_rcnn_output_layers(x, w_cls, b_cls, w_bbox, b_bbox, *,
                            compute_dtype=jnp.bfloat16,
                            tile_n=None, tile_k=None, mode="auto"):
    """Convenience wrapper. For repeated calls, hoist fuse_head_params()."""
    fused_w, fused_b, c_cls, c_box = fuse_head_params(
        w_cls, b_cls, w_bbox, b_bbox, compute_dtype=compute_dtype)
    return fast_rcnn_output_layers_fused(
        x, fused_w, fused_b, c_cls, c_box,
        tile_n=tile_n, tile_k=tile_k, mode=mode)


# ---------------------------------------------------------------------------
# Parameter init matching the PyTorch __init__ semantics
# ---------------------------------------------------------------------------
def init_params(key, input_size, num_classes, cls_agnostic_bbox_reg,
                box_dim=4, loss_type="default"):
    k_cls, k_box = jax.random.split(key)
    c_cls = num_classes + 1
    num_bbox_reg_classes = 1 if cls_agnostic_bbox_reg else num_classes
    c_box = num_bbox_reg_classes * box_dim

    # nn.init.normal_(std=...) on (out, in) weights; stored transposed (in, out).
    w_cls = 0.01 * jax.random.normal(k_cls, (input_size, c_cls), jnp.float32)
    w_bbox = 0.001 * jax.random.normal(k_box, (input_size, c_box), jnp.float32)
    b_cls = jnp.zeros((c_cls,), jnp.float32)
    b_bbox = jnp.zeros((c_box,), jnp.float32)

    if loss_type == "focal" and num_classes > 0:
        nc = min(100, num_classes)
        prior_prob = 1.0 / nc
        bias_value = -math.log((1.0 - prior_prob) / prior_prob)
        b_cls = jnp.full((c_cls,), bias_value, jnp.float32)

    return w_cls, b_cls, w_bbox, b_bbox


if __name__ == "__main__":
    key = jax.random.PRNGKey(0)
    k_x, k_p, k_x2, k_p2 = jax.random.split(key, 4)

    # ---- Case 1: small ROI-feature-like input, f32 path (resident). --------
    num_classes = 8
    box_dim = 4
    x = jax.random.normal(k_x, (8, 4, 4, 4), jnp.float32)   # (N, C, H, W)
    input_size = 4 * 4 * 4

    w_cls, b_cls, w_bbox, b_bbox = init_params(
        k_p, input_size, num_classes, cls_agnostic_bbox_reg=False,
        box_dim=box_dim)

    scores, deltas = fast_rcnn_output_layers(
        x, w_cls, b_cls, w_bbox, b_bbox, compute_dtype=jnp.float32)
    jax.block_until_ready((scores, deltas))

    x_flat = x.reshape(x.shape[0], -1)
    ref_scores = x_flat @ w_cls + b_cls
    ref_deltas = x_flat @ w_bbox + b_bbox
    assert scores.shape == (8, num_classes + 1)
    assert deltas.shape == (8, num_classes * box_dim)
    assert jnp.allclose(scores, ref_scores, atol=2e-3)
    assert jnp.allclose(deltas, ref_deltas, atol=2e-3)

    # ---- Case 2: non-aligned shapes, bf16, forced K-tiled fallback path. ---
    n2, d2, nc2 = 200, 300, 20
    x2 = jax.random.normal(k_x2, (n2, d2), jnp.float32)
    w_cls2, b_cls2, w_bbox2, b_bbox2 = init_params(
        k_p2, d2, nc2, cls_agnostic_bbox_reg=False, box_dim=4,
        loss_type="focal")

    # Hoisted fusion (done once; reused across the calls below).
    fused_w2, fused_b2, c_cls2, c_box2 = fuse_head_params(
        w_cls2, b_cls2, w_bbox2, b_bbox2, compute_dtype=jnp.bfloat16)

    scores2, deltas2 = fast_rcnn_output_layers_fused(
        x2, fused_w2, fused_b2, c_cls2, c_box2,
        tile_n=64, tile_k=128, mode="ktiled")
    jax.block_until_ready((scores2, deltas2))

    # Reference with the same bf16 input rounding (f32 accumulation on MXU).
    x2_bf = x2.astype(jnp.bfloat16).astype(jnp.float32)
    wc2_bf = w_cls2.astype(jnp.bfloat16).astype(jnp.float32)
    wb2_bf = w_bbox2.astype(jnp.bfloat16).astype(jnp.float32)
    ref_scores2 = x2_bf @ wc2_bf + b_cls2
    ref_deltas2 = x2_bf @ wb2_bf + b_bbox2
    assert scores2.shape == (n2, nc2 + 1)
    assert deltas2.shape == (n2, nc2 * 4)
    assert jnp.allclose(scores2, ref_scores2, atol=1e-4, rtol=1e-4)
    assert jnp.allclose(deltas2, ref_deltas2, atol=1e-4, rtol=1e-4)
    # Sanity vs the full-f32 reference (bf16 inputs => looser tolerance).
    assert jnp.allclose(scores2, x2 @ w_cls2 + b_cls2, atol=1e-2)
    assert jnp.allclose(deltas2, x2 @ w_bbox2 + b_bbox2, atol=1e-2)

    # ---- Case 3: same data, auto (resident-weight) path, bf16. -------------
    scores3, deltas3 = fast_rcnn_output_layers_fused(
        x2, fused_w2, fused_b2, c_cls2, c_box2, mode="auto")
    jax.block_until_ready((scores3, deltas3))
    assert jnp.allclose(scores3, ref_scores2, atol=1e-4, rtol=1e-4)
    assert jnp.allclose(deltas3, ref_deltas2, atol=1e-4, rtol=1e-4)

    print("KERNEL_OK")
</pallas_src>

<mosaic_0001>
module attributes {stable_mosaic.version = 11 : i64} {
  func.func @_resident_heads_kernel(%arg0: i32, %arg1: memref<8x64xf32, #tpu.memory_space<vmem>>, %arg2: memref<64x128xf32, #tpu.memory_space<vmem>>, %arg3: memref<1x128xf32, #tpu.memory_space<vmem>>, %arg4: memref<8x128xf32, #tpu.memory_space<vmem>>) attributes {dimension_semantics = [#tpu.dimension_semantics<parallel>], iteration_bounds = array<i64: 1>, scalar_prefetch = 0 : i64, scratch_operands = 0 : i64, tpu.core_type = #tpu.core_type<tc>, window_params = [{transform_indices = @transform_0, window_bounds = array<i64: 8, 64>}, {pipeline_mode = #tpu.pipeline_mode<synchronous>, transform_indices = @transform_1, window_bounds = array<i64: 64, 128>}, {pipeline_mode = #tpu.pipeline_mode<synchronous>, transform_indices = @transform_2, window_bounds = array<i64: 1, 128>}, {transform_indices = @transform_3, window_bounds = array<i64: 8, 128>}]} {
    %c0 = arith.constant 0 : index
    %c0_0 = arith.constant 0 : index
    %0 = vector.load %arg1[%c0, %c0_0] : memref<8x64xf32, #tpu.memory_space<vmem>>, vector<8x64xf32>
    %c0_1 = arith.constant 0 : index
    %c0_2 = arith.constant 0 : index
    %1 = vector.load %arg2[%c0_1, %c0_2] : memref<64x128xf32, #tpu.memory_space<vmem>>, vector<64x128xf32>
    %cst = arith.constant dense<0.000000e+00> : vector<8x128xf32>
    %2 = tpu.matmul %0, %1, %cst {dimension_numbers = #tpu.dot_dimension_numbers<[1], [0], [0], [1], [0, 0, 1, 1], [], []>} : vector<8x64xf32>, vector<64x128xf32>, vector<8x128xf32> -> vector<8x128xf32>
    %c0_3 = arith.constant 0 : index
    %c0_4 = arith.constant 0 : index
    %3 = vector.load %arg3[%c0_3, %c0_4] : memref<1x128xf32, #tpu.memory_space<vmem>>, vector<1x128xf32>
    %4 = vector.broadcast %3 : vector<1x128xf32> to vector<8x128xf32>
    %5 = arith.addf %2, %4 : vector<8x128xf32>
    %c0_5 = arith.constant 0 : index
    %c0_6 = arith.constant 0 : index
    %6 = vector.load %arg4[%c0_5, %c0_6] : memref<8x128xf32, #tpu.memory_space<vmem>>, vector<8x128xf32>
    tpu.vector_store %arg4[%c0_5, %c0_6], %5 {strides = array<i32>} : memref<8x128xf32, #tpu.memory_space<vmem>>, vector<8x128xf32>,
    return
  }
  func.func @transform_0(%arg0: i32) -> (i32, i32) {
    %c0_i32 = arith.constant 0 : i32
    %c0_i32_0 = arith.constant 0 : i32
    return %arg0, %c0_i32 : i32, i32
  }
  func.func @transform_1(%arg0: i32) -> (i32, i32) {
    %c0_i32 = arith.constant 0 : i32
    %c0_i32_0 = arith.constant 0 : i32
    %c0_i32_1 = arith.constant 0 : i32
    return %c0_i32, %c0_i32_0 : i32, i32
  }
  func.func @transform_2(%arg0: i32) -> (i32, i32) {
    %c0_i32 = arith.constant 0 : i32
    %c0_i32_0 = arith.constant 0 : i32
    %c0_i32_1 = arith.constant 0 : i32
    return %c0_i32, %c0_i32_0 : i32, i32
  }
  func.func @transform_3(%arg0: i32) -> (i32, i32) {
    %c0_i32 = arith.constant 0 : i32
    %c0_i32_0 = arith.constant 0 : i32
    return %arg0, %c0_i32 : i32, i32
  }
}

</mosaic_0001>

<bundles_post_ra>
// kernel: tpu_custom_call.1
= control target key start
LH: loop header
LB: loop body
LE: loop exit
PB: predicated region body
PF: predicated region fallthrough
CT: control target
= control target key end

     0   :  { %8 = vsyncpa [#allocation3], 0  ;;  %s344_s0 = inlined_call_operand.hbm [shape: f32[8,64], index: 0, kind: input, shape index: {}]   ;;  %s345_s1 = inlined_call_operand.hbm [shape: f32[64,128], index: 1, kind: input, shape index: {}]   ;;  %s346_s2 = inlined_call_operand.vmem [shape: f32[1,128], index: 2, kind: input, shape index: {}]   ;;  %s347_s3 = inlined_call_operand.hbm [shape: f32[8,128], index: 3, kind: output, shape index: {}]  }
   0x1   :  { %9 = vsyncpa [#allocation6], 0 }
   0x2   :  { %10 = vsyncpa [#allocation4], 0  ;;  %s270_s12 = smov [#allocation2]   ;;  %s271_s14 = smov [#allocation5]  }
   0x3   :  { %s17_s13 = sshll.u32 %s270_s12, 4  ;;  %s26_s15 = sshll.u32 %s271_s14, 4  ;;  %s18_s13 = int_to_ptr.vmem [resolvable:$true] %s17_s13  ;;  %s298_s15 = int_to_ptr.vmem [resolvable:$true] %s26_s15 }
   0x4   :  { %s198_s18 = scalar_lea.hbm %s344_s0, 128 }
   0x5   :  { %p199_p0 = scmp.ne.s32.totalorder %s344_s0, %s198_s18  ;;  %p202_p1 = scmp.lt.u32.totalorder %s198_s18, %s344_s0 }
   0x7   :  { %p204_p2 = pnand %p202_p1, %p199_p0 }
   0x9   :  { %207 = shalt.err (!%p204_p2)
}
   0xa   :  { %s208_s23 = scalar_lea.vmem %s18_s13, 128  ;;  %p213_p4 = scmp.lt.s32.totalorder %s18_s13, %s18_s13 }
   0xb   :  { %p209_p3 = scmp.ne.s32.totalorder %s18_s13, %s208_s23  ;;  %p214_p5 = scmp.lt.s32.totalorder %s208_s23, %s208_s23 }
   0xd   :  { %p215_p6 = por %p214_p5, %p213_p4 }
   0xf   :  { %p216_p7 = pnand %p215_p6, %p209_p3 }
  0x11   :  { %219 = shalt.err (!%p216_p7)
}
  0x12   :  { %20 = dma.hbm_to_vmem [thread:$0]  %s344_s0, 128, %s18_s13, [#allocation3]  }
  0x13   :  { %s220_s28 = scalar_lea.hbm %s345_s1, 1024 }
  0x14   :  { %p221_p8 = scmp.ne.s32.totalorder %s345_s1, %s220_s28  ;;  %p224_p9 = scmp.lt.u32.totalorder %s220_s28, %s345_s1 }
  0x16   :  { %p226_p10 = pnand %p224_p9, %p221_p8 }
  0x18   :  { %229 = shalt.err (!%p226_p10)
}
  0x19   :  { %s230_s6 = scalar_lea.vmem %s298_s15, 1024  ;;  %p235_p12 = scmp.lt.s32.totalorder %s298_s15, %s298_s15 }
  0x1a   :  { %p231_p11 = scmp.ne.s32.totalorder %s298_s15, %s230_s6  ;;  %p236_p13 = scmp.lt.s32.totalorder %s230_s6, %s230_s6 }
  0x1c   :  { %p237_p0 = por %p236_p13, %p235_p12 }
  0x1e   :  { %p238_p1 = pnand %p237_p0, %p231_p11 }
  0x20   :  { %241 = shalt.err (!%p238_p1)
}
  0x21   :  { %s272_s0 = smov 128   ;;  %s273_s7 = smov 8  }
  0x22   :  { %32 = dma.hbm_to_vmem [thread:$0]  %s345_s1, 1024, %s298_s15, [#allocation6], %s272_s0, %s272_s0, %s273_s7  }
  0x23   :  { %264 = dma.done.wait [#allocation3], 128  }
  0x24   :  { %265 = vsyncadd [#allocation3], 4294967168 }
  0x25   :  { %266 = dma.done.wait [#allocation6], 1024  }
  0x26   :  { %267 = vsyncadd [#allocation6], 4294966272  ;;  %v274_v0 = vmov 0.0|0.0   ;;  %vm275_vm0 = vmmov 0   ;;  %v276_v1 = vmov 0.0   ;;  %v42_v2 = vld [vmem:[#allocation5] sm:$0xff] }
  0x27   :  { %178 = vmatprep.subr.bf16.mxu0 %v274_v0  ;;  %175 = vmatprep.mubr.msk.f32.mxu0 %vm275_vm0, %v276_v1  ;;  %v43_v3 = vld [vmem:[#allocation5 + $0x8] sm:$0xff]  ;;  %v44_v4 = vld [vmem:[#allocation5 + $0x10] sm:$0xff]  ;;  %v45_v6 = vld [vmem:[#allocation5 + $0x18] sm:$0xff]  ;;  %vm57_vm1 = vcmask 523264   ;;  %s277_s11 = smov [#allocation7]  }
  0x28   :  { %v179_v5 = vpack.c.bf16 %v43_v3, %v42_v2  ;;  %v182_v7 = vpack.c.bf16 %v45_v6, %v44_v4  ;;  %v46_v8 = vld [vmem:[#allocation5 + $0x20] sm:$0xff]  ;;  %v47_v9 = vld [vmem:[#allocation5 + $0x28] sm:$0xff]  ;;  %v48_v11 = vld [vmem:[#allocation5 + $0x30] sm:$0xff]  ;;  %s138_s12 = sshll.u32 %s277_s11, 4  ;;  %s139_s12 = int_to_ptr.vmem [resolvable:$true] %s138_s12 }
  0x29   :  { %v185_v10 = vpack.c.bf16 %v47_v9, %v46_v8  ;;  %v49_v12 = vld [vmem:[#allocation5 + $0x38] sm:$0xff]  ;;  %s242_s13 = scalar_lea.vmem %s139_s12, 128  ;;  %p247_p3 = scmp.lt.s32.totalorder %s139_s12, %s139_s12 }
  0x2a   :  { %180 = vmatpush3.bf16.msra.mxu0 %v179_v5  ;;  %v188_v13 = vpack.c.bf16 %v49_v12, %v48_v11  ;;  %v41_v14 = vld [vmem:[#allocation2] sm:$0xff]  ;;  %p243_p2 = scmp.ne.s32.totalorder %s139_s12, %s242_s13  ;;  %p248_p4 = scmp.lt.s32.totalorder %s242_s13, %s242_s13 }
  0x2b   :  { %181 = vmatprep.subr.bf16.mxu0 %v274_v0  ;;  %v148_v15 = vld [vmem:[%s346_s2] ss:$0 sm:$0xff] }
  0x2c   :  { %p249_p5 = por %p248_p4, %p247_p3 }
  0x2e   :  { %183 = vmatpush3.bf16.msra.mxu0 %v182_v7  ;;  %p250_p6 = pnand %p249_p5, %p243_p2 }
  0x2f   :  { %184 = vmatprep.subr.bf16.mxu0 %v274_v0 }
  0x32   :  { %186 = vmatpush3.bf16.msra.mxu0 %v185_v10 }
  0x33   :  { %187 = vmatprep.subr.bf16.mxu0 %v274_v0 }
  0x36   :  { %189 = vmatpush3.bf16.msra.mxu0 %v188_v13 }
  0x39   :  { %176 = vmatmul.mubr.msk.f32.vlgmr.msra.gmra.mrb[0].mxu0 %vm57_vm1, %v41_v14 }
 0x10c   :  { %v127_v16 = vpop.f32.mrb[0].mxu0 }
 0x10d   :  { %v128_v17 = vadd.f32 %v148_v15, %v127_v16  ;;  %v177_v18 = vpop.f32.mrb[1].mxu0 }
 0x10f   :  { %131 = vst [vmem:[#allocation7] sm:$0xff] %v128_v17 }
 0x110   :  { %253 = shalt.err (!%p250_p6)
}
 0x111   :  { %s254_s16 = scalar_lea.hbm %s347_s3, 128 }
 0x112   :  { %p255_p7 = scmp.ne.s32.totalorder %s347_s3, %s254_s16  ;;  %p258_p8 = scmp.lt.u32.totalorder %s254_s16, %s347_s3 }
 0x114   :  { %p260_p9 = pnand %p258_p8, %p255_p7 }
 0x116   :  { %263 = shalt.err (!%p260_p9)
}
 0x117   :  { %141 = dma.vmem_to_hbm [thread:$0]  %s139_s12, 128, %s347_s3, [#allocation4]  }
 0x118   :  { %268 = dma.done.wait [#allocation4], 128  }
 0x119   :  { %269 = vsyncadd [#allocation4], 4294967168 }
 0x11a   :  { %145 = vsyncpa [#allocation3], 1 }
 0x11b   :  { %146 = vsyncpa [#allocation6], 1 }
 0x11c   :  { %147 = vsyncpa [#allocation4], 1 }

</bundles_post_ra>
